<compile_context>
chip_gen: v7x
topology: tpu7x:2x2x1
jax: 0.10.0
libtpu: 0.0.40
codegen_flags: <defaults>
</compile_context>

<pallas_src>
import functools
import math

import jax
import jax.numpy as jnp
from jax.experimental import pallas as pl
from jax.experimental.pallas import tpu as pltpu


def _round_up(x: int, m: int) -> int:
    return ((x + m - 1) // m) * m


# -----------------------------------------------------------------------------
# Kernel 1: fused linear layer  y = act(x @ w + b)
# -----------------------------------------------------------------------------
def _linear_kernel(x_ref, w_ref, b_ref, o_ref, acc_ref, *, act):
    k = pl.program_id(2)

    @pl.when(k == 0)
    def _():
        acc_ref[...] = jnp.zeros_like(acc_ref)

    acc_ref[...] += jnp.dot(x_ref[...], w_ref[...],
                            preferred_element_type=jnp.float32)

    @pl.when(k == pl.num_programs(2) - 1)
    def _():
        y = acc_ref[...] + b_ref[...]
        if act == "relu":
            y = jnp.maximum(y, 0.0)
        elif act == "leaky_relu":          # PyTorch default negative_slope = 0.01
            y = jnp.where(y >= 0.0, y, 0.01 * y)
        o_ref[...] = y.astype(o_ref.dtype)


@functools.lru_cache(maxsize=None)
def _linear_callable(m, k, n, act):
    # Tiles: full extent when small, otherwise (8,128)-aligned blocks.  The caps keep the
    # double-buffered working set at a few MiB -> safe on v5e/v6e (128 MiB VMEM) and on
    # v7x (64 MiB physical / 32 MiB default scoped VMEM).
    tm = min(256, _round_up(m, 8))
    tk = min(512, _round_up(k, 128))
    tn = min(256, _round_up(n, 128))
    mp, kp, np_ = _round_up(m, tm), _round_up(k, tk), _round_up(n, tn)
    grid = (mp // tm, np_ // tn, kp // tk)

    call = pl.pallas_call(
        functools.partial(_linear_kernel, act=act),
        out_shape=jax.ShapeDtypeStruct((mp, np_), jnp.float32),
        grid_spec=pltpu.PrefetchScalarGridSpec(
            num_scalar_prefetch=0,
            grid=grid,
            in_specs=[
                pl.BlockSpec((tm, tk), lambda i, j, kk: (i, kk)),
                pl.BlockSpec((tk, tn), lambda i, j, kk: (kk, j)),
                pl.BlockSpec((1, tn), lambda i, j, kk: (0, j)),
            ],
            out_specs=pl.BlockSpec((tm, tn), lambda i, j, kk: (i, j)),
            scratch_shapes=[pltpu.VMEM((tm, tn), jnp.float32)],
        ),
        compiler_params=pltpu.CompilerParams(
            dimension_semantics=("parallel", "parallel", "arbitrary")),
    )

    def run(x, w, b):
        # Pad only up to the tile multiples (zero rows / cols do not change the matmul).
        x32 = jnp.pad(x.astype(jnp.float32), ((0, mp - m), (0, kp - k)))
        w32 = jnp.pad(w.astype(jnp.float32), ((0, kp - k), (0, np_ - n)))
        b32 = jnp.pad(b.astype(jnp.float32).reshape(1, n), ((0, 0), (0, np_ - n)))
        out = call(x32, w32, b32)
        return out[:m, :n]

    return jax.jit(run)


def pallas_linear(x, w, b, act=None):
    return _linear_callable(x.shape[0], x.shape[1], w.shape[1], act)(x, w, b)


# -----------------------------------------------------------------------------
# Kernel 2: per-head fused attention  softmax(Q K^T * scale + mask) V
# -----------------------------------------------------------------------------
def _attn_kernel(q_ref, k_ref, v_ref, m_ref, o_ref, *, scale):
    q = q_ref[...]
    k = k_ref[...]
    v = v_ref[...]
    s = jax.lax.dot_general(q, k, (((1,), (1,)), ((), ())),
                            preferred_element_type=jnp.float32) * scale
    s = s + m_ref[...]
    s = s - jnp.max(s, axis=-1, keepdims=True)
    p = jnp.exp(s)
    denom = jnp.sum(p, axis=-1, keepdims=True)
    o = jnp.dot(p, v, preferred_element_type=jnp.float32)
    o_ref[...] = (o / denom).astype(o_ref.dtype)


@functools.lru_cache(maxsize=None)
def _attention_callable(h, lq, lk, dh, scale):
    call = pl.pallas_call(
        functools.partial(_attn_kernel, scale=scale),
        out_shape=jax.ShapeDtypeStruct((h, lq, dh), jnp.float32),
        grid_spec=pltpu.PrefetchScalarGridSpec(
            num_scalar_prefetch=0,
            grid=(h,),
            in_specs=[
                pl.BlockSpec((None, lq, dh), lambda hh: (hh, 0, 0)),
                pl.BlockSpec((None, lk, dh), lambda hh: (hh, 0, 0)),
                pl.BlockSpec((None, lk, dh), lambda hh: (hh, 0, 0)),
                pl.BlockSpec((lq, lk), lambda hh: (0, 0)),
            ],
            out_specs=pl.BlockSpec((None, lq, dh), lambda hh: (hh, 0, 0)),
        ),
        compiler_params=pltpu.CompilerParams(dimension_semantics=("parallel",)),
    )

    def run(qh, kh, vh, mask):
        return call(qh.astype(jnp.float32), kh.astype(jnp.float32),
                    vh.astype(jnp.float32), mask.astype(jnp.float32))

    return jax.jit(run)


def pallas_attention(qh, kh, vh, mask, scale):
    # TODO(synk): for very long sequences the full (Lq, Lk) score tile lives in VMEM;
    # a flash-style K-tiled online-softmax variant would be needed there.
    h, lq, dh = qh.shape
    lk = kh.shape[1]
    return _attention_callable(h, lq, lk, dh, float(scale))(qh, kh, vh, mask)


# -----------------------------------------------------------------------------
# Pure-JAX reference implementations (used only for the self-check).
# -----------------------------------------------------------------------------
def ref_linear(x, w, b, act=None):
    y = jnp.dot(x.astype(jnp.float32), w.astype(jnp.float32)) + b
    if act == "relu":
        y = jnp.maximum(y, 0.0)
    elif act == "leaky_relu":
        y = jnp.where(y >= 0.0, y, 0.01 * y)
    return y


def ref_attention(qh, kh, vh, mask, scale):
    s = jnp.einsum("hqd,hkd->hqk", qh, kh) * scale + mask[None]
    s = s - jnp.max(s, axis=-1, keepdims=True)
    p = jnp.exp(s)
    return jnp.einsum("hqk,hkd->hqd", p, vh) / jnp.sum(p, axis=-1, keepdims=True)


# -----------------------------------------------------------------------------
# Model glue (shared by the Pallas path and the reference path).
# -----------------------------------------------------------------------------
def layer_norm(x, g, b, eps=1e-5):
    mu = jnp.mean(x, axis=-1, keepdims=True)
    var = jnp.mean(jnp.square(x - mu), axis=-1, keepdims=True)
    return (x - mu) * jax.lax.rsqrt(var + eps) * g + b


def mix_pe_feature(features, coords, n_padding):
    # pad_x (ConstantPad1d on features.t()) + D3PositionalEncoderC (same zero-row pad on
    # coords) + torch.cat(dim=1).  Pure data movement: pad only the n_padding extra rows.
    f = jnp.pad(features.astype(jnp.float32), ((0, n_padding), (0, 0)))
    c = jnp.pad(coords.astype(jnp.float32), ((0, n_padding), (0, 0)))
    return jnp.concatenate([f, c], axis=1)


def multi_head_attention(p, q, k, v, mask, nhead, linear_fn, attn_fn):
    lq, d_model = q.shape
    lk = k.shape[0]
    dh = d_model // nhead
    qh = linear_fn(q, p["wq"], p["bq"]).reshape(lq, nhead, dh).transpose(1, 0, 2)
    kh = linear_fn(k, p["wk"], p["bk"]).reshape(lk, nhead, dh).transpose(1, 0, 2)
    vh = linear_fn(v, p["wv"], p["bv"]).reshape(lk, nhead, dh).transpose(1, 0, 2)
    o = attn_fn(qh, kh, vh, mask, 1.0 / math.sqrt(dh))
    o = o.transpose(1, 0, 2).reshape(lq, d_model)
    return linear_fn(o, p["wo"], p["bo"])


def encoder_layer(p, x, src_mask, nhead, linear_fn, attn_fn):
    a = multi_head_attention(p["attn"], x, x, x, src_mask, nhead, linear_fn, attn_fn)
    x = layer_norm(x + a, p["ln1_g"], p["ln1_b"])
    f = linear_fn(x, p["ff_w1"], p["ff_b1"], act="relu")
    f = linear_fn(f, p["ff_w2"], p["ff_b2"])
    return layer_norm(x + f, p["ln2_g"], p["ln2_b"])


def decoder_layer(p, x, mem, tgt_mask, mem_mask, nhead, linear_fn, attn_fn):
    a = multi_head_attention(p["self_attn"], x, x, x, tgt_mask, nhead, linear_fn, attn_fn)
    x = layer_norm(x + a, p["ln1_g"], p["ln1_b"])
    a = multi_head_attention(p["cross_attn"], x, mem, mem, mem_mask, nhead, linear_fn, attn_fn)
    x = layer_norm(x + a, p["ln2_g"], p["ln2_b"])
    f = linear_fn(x, p["ff_w1"], p["ff_b1"], act="relu")
    f = linear_fn(f, p["ff_w2"], p["ff_b2"])
    return layer_norm(x + f, p["ln3_g"], p["ln3_b"])


def transformer(p, src, tgt, src_mask, tgt_mask, mem_mask, nhead, linear_fn, attn_fn):
    mem = src
    for lp in p["encoder"]:
        mem = encoder_layer(lp, mem, src_mask, nhead, linear_fn, attn_fn)
    mem = layer_norm(mem, p["enc_norm_g"], p["enc_norm_b"])
    out = tgt
    for lp in p["decoder"]:
        out = decoder_layer(lp, out, mem, tgt_mask, mem_mask, nhead, linear_fn, attn_fn)
    return layer_norm(out, p["dec_norm_g"], p["dec_norm_b"])


def pad_pair_mask(length, n_pad):
    # tgt_mask of forward1/forward2: a padded row may not attend to *another* padded row.
    idx = jnp.arange(length)
    is_pad = idx >= (length - n_pad)
    blocked = is_pad[:, None] & is_pad[None, :] & (idx[:, None] != idx[None, :])
    return jnp.where(blocked, -1e9, 0.0).astype(jnp.float32)


def head_mlp(p, x, linear_fn):
    h = linear_fn(x, p["w1"], p["b1"], act="leaky_relu")
    return linear_fn(h, p["w2"], p["b2"])


def d3g_pair_transformer_forward(params, features_pro, coords_pro, features_lig, coords_lig,
                                 nhead, linear_fn, attn_fn):
    n_pad = 3
    pe_pro = mix_pe_feature(features_pro, coords_pro, n_pad)     # (N_pro + 3, d_model)
    pe_lig = mix_pe_feature(features_lig, coords_lig, n_pad)     # (N_lig + 3, d_model)
    l_pro, l_lig = pe_pro.shape[0], pe_lig.shape[0]

    # forward1: transformer1(src = pe_pro[:-3], tgt = pe_lig)
    src1 = pe_pro[:-n_pad]
    src_mask1 = jnp.zeros((src1.shape[0], src1.shape[0]), jnp.float32)
    tgt_mask1 = pad_pair_mask(l_lig, n_pad)
    mem_mask1 = jnp.zeros((l_lig, src1.shape[0]), jnp.float32)
    out1 = transformer(params["t1"], src1, pe_lig, src_mask1, tgt_mask1, mem_mask1,
                       nhead, linear_fn, attn_fn)

    # forward2: transformer2(src = pe_lig[:-3], tgt = pe_pro)
    src2 = pe_lig[:-n_pad]
    src_mask2 = jnp.zeros((src2.shape[0], src2.shape[0]), jnp.float32)
    tgt_mask2 = pad_pair_mask(l_pro, n_pad)
    mem_mask2 = jnp.zeros((l_pro, src2.shape[0]), jnp.float32)
    out2 = transformer(params["t2"], src2, pe_pro, src_mask2, tgt_mask2, mem_mask2,
                       nhead, linear_fn, attn_fn)

    # Shared global heads on rows [-3], [-2], [-1]; both directions batched together.
    feat = head_mlp(params["featureHead"], jnp.stack([out2[-3], out1[-3]]), linear_fn)
    cent = head_mlp(params["centroidHead"], jnp.stack([out2[-2], out1[-2]]), linear_fn)
    dirn = head_mlp(params["directionHead"], jnp.stack([out2[-1], out1[-1]]), linear_fn)
    # Return order matches the PyTorch module: (F2, F1, C2, C1, D2, D1)
    return (feat[0], feat[1], cent[0], cent[1], dirn[0], dirn[1])


# -----------------------------------------------------------------------------
# Parameter construction (random weights; the reference module also uses random init).
# -----------------------------------------------------------------------------
class _KeyGen:
    def __init__(self, key):
        self._key = key

    def __call__(self):
        self._key, sub = jax.random.split(self._key)
        return sub


def init_params(key, d_model, d_ff, n_enc, n_dec):
    kg = _KeyGen(key)

    def dense(shape, scale=0.05):
        return scale * jax.random.normal(kg(), shape, dtype=jnp.float32)

    def attn():
        return {"wq": dense((d_model, d_model)), "bq": dense((d_model,), 0.02),
                "wk": dense((d_model, d_model)), "bk": dense((d_model,), 0.02),
                "wv": dense((d_model, d_model)), "bv": dense((d_model,), 0.02),
                "wo": dense((d_model, d_model)), "bo": dense((d_model,), 0.02)}

    def ln():
        return jnp.ones((d_model,), jnp.float32), jnp.zeros((d_model,), jnp.float32)

    def enc():
        g1, b1 = ln()
        g2, b2 = ln()
        return {"attn": attn(),
                "ff_w1": dense((d_model, d_ff)), "ff_b1": dense((d_ff,), 0.02),
                "ff_w2": dense((d_ff, d_model)), "ff_b2": dense((d_model,), 0.02),
                "ln1_g": g1, "ln1_b": b1, "ln2_g": g2, "ln2_b": b2}

    def dec():
        g1, b1 = ln()
        g2, b2 = ln()
        g3, b3 = ln()
        return {"self_attn": attn(), "cross_attn": attn(),
                "ff_w1": dense((d_model, d_ff)), "ff_b1": dense((d_ff,), 0.02),
                "ff_w2": dense((d_ff, d_model)), "ff_b2": dense((d_model,), 0.02),
                "ln1_g": g1, "ln1_b": b1, "ln2_g": g2, "ln2_b": b2,
                "ln3_g": g3, "ln3_b": b3}

    def tr():
        eg, eb = ln()
        dg, db = ln()
        return {"encoder": [enc() for _ in range(n_enc)],
                "decoder": [dec() for _ in range(n_dec)],
                "enc_norm_g": eg, "enc_norm_b": eb,
                "dec_norm_g": dg, "dec_norm_b": db}

    def head(out_dim):
        return {"w1": dense((d_model, 2 * d_model)), "b1": dense((2 * d_model,), 0.02),
                "w2": dense((2 * d_model, out_dim)), "b2": dense((out_dim,), 0.02)}

    return {"t1": tr(), "t2": tr(),
            "featureHead": head(d_model), "centroidHead": head(3),
            "directionHead": head(3)}


# -----------------------------------------------------------------------------
# Test driver
# -----------------------------------------------------------------------------
if __name__ == "__main__":
    # Small, module-consistent configuration.  (Module defaults: d_model=512, ff=2048,
    # nn.Transformer's default 6+6 layers, nhead=5 -- note 512 % 5 != 0, so a head count
    # that divides d_model is used for the test.)
    d_model = 32
    nhead = 4
    d_ff = 64
    n_enc = n_dec = 2
    n_pro, n_lig = 12, 9
    feat_dim = d_model - 3          # concat([features, coords(3)]) must give d_model lanes

    key = jax.random.PRNGKey(0)
    k_par, k_fp, k_cp, k_fl, k_cl = jax.random.split(key, 5)
    params = init_params(k_par, d_model, d_ff, n_enc, n_dec)
    features_pro = jax.random.normal(k_fp, (n_pro, feat_dim), jnp.float32)
    coords_pro = 3.0 * jax.random.normal(k_cp, (n_pro, 3), jnp.float32)
    features_lig = jax.random.normal(k_fl, (n_lig, feat_dim), jnp.float32)
    coords_lig = 3.0 * jax.random.normal(k_cl, (n_lig, 3), jnp.float32)

    outs = d3g_pair_transformer_forward(
        params, features_pro, coords_pro, features_lig, coords_lig,
        nhead=nhead, linear_fn=pallas_linear, attn_fn=pallas_attention)
    outs = jax.block_until_ready(outs)

    refs = d3g_pair_transformer_forward(
        params, features_pro, coords_pro, features_lig, coords_lig,
        nhead=nhead, linear_fn=ref_linear, attn_fn=ref_attention)

    names = ["globalBindingFeature2", "globalBindingFeature1",
             "globalBindingCentroid2", "globalBindingCentroid1",
             "globalBindingDirection2", "globalBindingDirection1"]
    expected = [(d_model,), (d_model,), (3,), (3,), (3,), (3,)]
    for name, o, r, shp in zip(names, outs, refs, expected):
        assert o.shape == shp, (name, o.shape, shp)
        assert bool(jnp.all(jnp.isfinite(o))), name
        err = float(jnp.max(jnp.abs(o - r)))
        tol = 5e-2 * max(1.0, float(jnp.max(jnp.abs(r))))
        assert err <= tol, (name, err, tol)
    print("KERNEL_OK")
</pallas_src>

<mosaic_0001>
module attributes {stable_mosaic.version = 11 : i64} {
  func.func @_linear_kernel(%arg0: i32, %arg1: i32, %arg2: i32, %arg3: memref<16x128xf32, #tpu.memory_space<vmem>>, %arg4: memref<128x128xf32, #tpu.memory_space<vmem>>, %arg5: memref<1x128xf32, #tpu.memory_space<vmem>>, %arg6: memref<16x128xf32, #tpu.memory_space<vmem>>, %arg7: memref<16x128xf32, #tpu.memory_space<vmem>>) attributes {dimension_semantics = [#tpu.dimension_semantics<parallel>, #tpu.dimension_semantics<parallel>, #tpu.dimension_semantics<arbitrary>], iteration_bounds = array<i64: 1, 1, 1>, scalar_prefetch = 0 : i64, scratch_operands = 1 : i64, tpu.core_type = #tpu.core_type<tc>, window_params = [{transform_indices = @transform_0, window_bounds = array<i64: 16, 128>}, {transform_indices = @transform_1, window_bounds = array<i64: 128, 128>}, {transform_indices = @transform_2, window_bounds = array<i64: 1, 128>}, {transform_indices = @transform_3, window_bounds = array<i64: 16, 128>}]} {
    %c0_i32 = arith.constant 0 : i32
    %0 = arith.cmpi eq, %arg2, %c0_i32 : i32
    %1 = arith.extui %0 : i1 to i32
    %c0_i32_0 = arith.constant 0 : i32
    %2 = arith.cmpi ne, %1, %c0_i32_0 : i32
    scf.if %2 {
      %cst_10 = arith.constant 0.000000e+00 : f32
      %12 = vector.broadcast %cst_10 : f32 to vector<16x128xf32>
      %c0_11 = arith.constant 0 : index
      %c0_12 = arith.constant 0 : index
      %13 = vector.load %arg7[%c0_11, %c0_12] : memref<16x128xf32, #tpu.memory_space<vmem>>, vector<16x128xf32>
      tpu.vector_store %arg7[%c0_11, %c0_12], %12 {strides = array<i32>} : memref<16x128xf32, #tpu.memory_space<vmem>>, vector<16x128xf32>,
    } else {
    }
    %c0 = arith.constant 0 : index
    %c0_1 = arith.constant 0 : index
    %3 = vector.load %arg7[%c0, %c0_1] : memref<16x128xf32, #tpu.memory_space<vmem>>, vector<16x128xf32>
    %c0_2 = arith.constant 0 : index
    %c0_3 = arith.constant 0 : index
    %4 = vector.load %arg3[%c0_2, %c0_3] : memref<16x128xf32, #tpu.memory_space<vmem>>, vector<16x128xf32>
    %c0_4 = arith.constant 0 : index
    %c0_5 = arith.constant 0 : index
    %5 = vector.load %arg4[%c0_4, %c0_5] : memref<128x128xf32, #tpu.memory_space<vmem>>, vector<128x128xf32>
    %cst = arith.constant dense<0.000000e+00> : vector<16x128xf32>
    %6 = tpu.matmul %4, %5, %cst {dimension_numbers = #tpu.dot_dimension_numbers<[1], [0], [0], [1], [0, 0, 1, 1], [], []>} : vector<16x128xf32>, vector<128x128xf32>, vector<16x128xf32> -> vector<16x128xf32>
    %7 = arith.addf %3, %6 : vector<16x128xf32>
    %c0_6 = arith.constant 0 : index
    %c0_7 = arith.constant 0 : index
    %8 = vector.load %arg7[%c0_6, %c0_7] : memref<16x128xf32, #tpu.memory_space<vmem>>, vector<16x128xf32>
    tpu.vector_store %arg7[%c0_6, %c0_7], %7 {strides = array<i32>} : memref<16x128xf32, #tpu.memory_space<vmem>>, vector<16x128xf32>,
    %c0_i32_8 = arith.constant 0 : i32
    %9 = arith.cmpi eq, %arg2, %c0_i32_8 : i32
    %10 = arith.extui %9 : i1 to i32
    %c0_i32_9 = arith.constant 0 : i32
    %11 = arith.cmpi ne, %10, %c0_i32_9 : i32
    scf.if %11 {
      %c0_10 = arith.constant 0 : index
      %c0_11 = arith.constant 0 : index
      %12 = vector.load %arg7[%c0_10, %c0_11] : memref<16x128xf32, #tpu.memory_space<vmem>>, vector<16x128xf32>
      %c0_12 = arith.constant 0 : index
      %c0_13 = arith.constant 0 : index
      %13 = vector.load %arg5[%c0_12, %c0_13] : memref<1x128xf32, #tpu.memory_space<vmem>>, vector<1x128xf32>
      %14 = vector.broadcast %13 : vector<1x128xf32> to vector<16x128xf32>
      %15 = arith.addf %12, %14 : vector<16x128xf32>
      %c0_14 = arith.constant 0 : index
      %c0_15 = arith.constant 0 : index
      %16 = vector.load %arg6[%c0_14, %c0_15] : memref<16x128xf32, #tpu.memory_space<vmem>>, vector<16x128xf32>
      tpu.vector_store %arg6[%c0_14, %c0_15], %15 {strides = array<i32>} : memref<16x128xf32, #tpu.memory_space<vmem>>, vector<16x128xf32>,
    } else {
    }
    return
  }
  func.func @transform_0(%arg0: i32, %arg1: i32, %arg2: i32) -> (i32, i32) {
    %c0_i32 = arith.constant 0 : i32
    return %arg0, %arg2 : i32, i32
  }
  func.func @transform_1(%arg0: i32, %arg1: i32, %arg2: i32) -> (i32, i32) {
    %c0_i32 = arith.constant 0 : i32
    return %arg2, %arg1 : i32, i32
  }
  func.func @transform_2(%arg0: i32, %arg1: i32, %arg2: i32) -> (i32, i32) {
    %c0_i32 = arith.constant 0 : i32
    %c0_i32_0 = arith.constant 0 : i32
    return %c0_i32, %arg1 : i32, i32
  }
  func.func @transform_3(%arg0: i32, %arg1: i32, %arg2: i32) -> (i32, i32) {
    %c0_i32 = arith.constant 0 : i32
    return %arg0, %arg1 : i32, i32
  }
}

</mosaic_0001>

<bundles_post_ra>
// kernel: run.1
= control target key start
LH: loop header
LB: loop body
LE: loop exit
PB: predicated region body
PF: predicated region fallthrough
CT: control target
= control target key end

     0   :  { %s357_s0 = inlined_call_operand.vmem [shape: f32[16,128], index: 0, kind: input, shape index: {}]   ;;  %s358_s1 = inlined_call_operand.vmem [shape: f32[128,128], index: 1, kind: input, shape index: {}]   ;;  %s359_s2 = inlined_call_operand.vmem [shape: f32[1,128], index: 2, kind: input, shape index: {}]   ;;  %s360_s3 = inlined_call_operand.hbm [shape: f32[16,128], index: 3, kind: output, shape index: {}]  }
   0x1   :  { %v25_v0 = vld [vmem:[%s358_s1] sm:$0xff]  ;;  %v26_v1 = vld [vmem:[%s358_s1 + $0x8] sm:$0xff]  ;;  %v27_v2 = vld [vmem:[%s358_s1 + $0x10] sm:$0xff] }
   0x2   :  { %v206_v3 = vpack.c.bf16 %v26_v1, %v25_v0  ;;  %v28_v4 = vld [vmem:[%s358_s1 + $0x18] sm:$0xff]  ;;  %v29_v6 = vld [vmem:[%s358_s1 + $0x20] sm:$0xff]  ;;  %v30_v7 = vld [vmem:[%s358_s1 + $0x28] sm:$0xff] }
   0x3   :  { %v210_v5 = vpack.c.bf16 %v28_v4, %v27_v2  ;;  %v214_v8 = vpack.c.bf16 %v30_v7, %v29_v6  ;;  %v23_v9 = vld [vmem:[%s357_s0] sm:$0xff]  ;;  %v31_v10 = vld [vmem:[%s358_s1 + $0x30] sm:$0xff]  ;;  %v32_v11 = vld [vmem:[%s358_s1 + $0x38] sm:$0xff] }
   0x4   :  { %207 = vmatprep.subr.bf16.mxu0 %v206_v3  ;;  %203 = vmatprep.mubr.f32.mxu0 %v23_v9 }
   0x5   :  { %209 = vmatpush3.bf16.msra.mxu0 %v206_v3 }
   0x6   :  { %211 = vmatprep.subr.bf16.mxu0 %v210_v5 }
   0x7   :  { %8 = vsyncpa [#allocation4], 0  ;;  %v218_v12 = vpack.c.bf16 %v32_v11, %v31_v10  ;;  %v33_v13 = vld [vmem:[%s358_s1 + $0x40] sm:$0xff]  ;;  %v34_v14 = vld [vmem:[%s358_s1 + $0x48] sm:$0xff]  ;;  %s265_s23 = smov [#allocation3]  }
   0x8   :  { %v222_v15 = vpack.c.bf16 %v34_v14, %v33_v13  ;;  %v35_v16 = vld [vmem:[%s358_s1 + $0x50] sm:$0xff]  ;;  %v36_v17 = vld [vmem:[%s358_s1 + $0x58] sm:$0xff]  ;;  %v37_v19 = vld [vmem:[%s358_s1 + $0x60] sm:$0xff]  ;;  %s141_s24 = sshll.u32 %s265_s23, 4  ;;  %s142_s24 = int_to_ptr.vmem [resolvable:$true] %s141_s24 }
   0x9   :  { %213 = vmatpush3.bf16.msra.mxu0 %v210_v5  ;;  %v226_v18 = vpack.c.bf16 %v36_v17, %v35_v16  ;;  %v38_v20 = vld [vmem:[%s358_s1 + $0x68] sm:$0xff]  ;;  %v39_v22 = vld [vmem:[%s358_s1 + $0x70] sm:$0xff]  ;;  %v40_v23 = vld [vmem:[%s358_s1 + $0x78] sm:$0xff]  ;;  %s241_s1 = scalar_lea.vmem %s142_s24, 256  ;;  %p246_p1 = scmp.lt.s32.totalorder %s142_s24, %s142_s24 }
   0xa   :  { %215 = vmatprep.subr.bf16.mxu0 %v214_v8  ;;  %v230_v21 = vpack.c.bf16 %v38_v20, %v37_v19  ;;  %v234_v24 = vpack.c.bf16 %v40_v23, %v39_v22  ;;  %v24_v25 = vld [vmem:[%s357_s0 + $0x8] sm:$0xff]  ;;  %v152_v26 = vld [vmem:[%s359_s2] ss:$0 sm:$0xff]  ;;  %p242_p0 = scmp.ne.s32.totalorder %s142_s24, %s241_s1  ;;  %p247_p2 = scmp.lt.s32.totalorder %s241_s1, %s241_s1 }
   0xc   :  { %p248_p3 = por %p247_p2, %p246_p1 }
   0xd   :  { %217 = vmatpush3.bf16.msra.mxu0 %v214_v8 }
   0xe   :  { %219 = vmatprep.subr.bf16.mxu0 %v218_v12  ;;  %p249_p4 = pnand %p248_p3, %p242_p0 }
  0x11   :  { %221 = vmatpush3.bf16.msra.mxu0 %v218_v12 }
  0x12   :  { %223 = vmatprep.subr.bf16.mxu0 %v222_v15 }
  0x15   :  { %225 = vmatpush3.bf16.msra.mxu0 %v222_v15 }
  0x16   :  { %227 = vmatprep.subr.bf16.mxu0 %v226_v18 }
  0x19   :  { %229 = vmatpush3.bf16.msra.mxu0 %v226_v18 }
  0x1a   :  { %231 = vmatprep.subr.bf16.mxu0 %v230_v21 }
  0x1d   :  { %233 = vmatpush3.bf16.msra.mxu0 %v230_v21 }
  0x1e   :  { %235 = vmatprep.subr.bf16.mxu0 %v234_v24 }
  0x21   :  { %237 = vmatpush3.bf16.msra.mxu0 %v234_v24 }
  0x24   :  { %204 = vmatmul.mubr.f32.vlgmr.msra.gmra.mrb[0].mxu0 %v24_v25 }
  0xf7   :  { %v205_v27 = vpop.f32.mrb[0].mxu0 }
  0xf8   :  { %v133_v28 = vadd.f32 %v205_v27, %v152_v26  ;;  %v107_v29 = vpop.f32.mrb[1].mxu0 }
  0xf9   :  { %v132_v30 = vadd.f32 %v152_v26, %v107_v29 }
  0xfa   :  { %135 = vst [vmem:[#allocation3 + $0x8] sm:$0xff] %v133_v28 }
  0xfb   :  { %134 = vst [vmem:[#allocation3] sm:$0xff] %v132_v30 }
  0xfc   :  { %252 = shalt.err (!%p249_p4)
}
  0xfd   :  { %s253_s2 = scalar_lea.hbm %s360_s3, 256 }
  0xfe   :  { %p254_p5 = scmp.ne.s32.totalorder %s360_s3, %s253_s2  ;;  %p257_p6 = scmp.lt.u32.totalorder %s253_s2, %s360_s3 }
 0x100   :  { %p259_p7 = pnand %p257_p6, %p254_p5 }
 0x102   :  { %262 = shalt.err (!%p259_p7)
}
 0x103   :  { %s266_s30 = smov 128   ;;  %s267_s4 = smov 8  }
 0x104   :  { %147 = dma.vmem_to_hbm [thread:$0]  %s142_s24, 256, %s360_s3, [#allocation4], %s266_s30, %s266_s30, %s267_s4  }
 0x105   :  { %263 = dma.done.wait [#allocation4], 256  }
 0x106   :  { %264 = vsyncadd [#allocation4], 4294967040 }
 0x107   :  { %151 = vsyncpa [#allocation4], 1 }

</bundles_post_ra>
